<compile_context>
chip_gen: v7x
topology: tpu7x:2x2x1
jax: 0.10.0
libtpu: 0.0.40
codegen_flags: <defaults>
</compile_context>

<pallas_src>
import jax
import jax.numpy as jnp
from jax.experimental import pallas as pl
from jax.experimental.pallas import tpu as pltpu


# ----------------------------------------------------------------------------
# Kernel
# ----------------------------------------------------------------------------
def stem_pool_head_kernel(x_ref, w_stem_ref, b_stem_ref,
                          w1_ref, b1_ref, w2_ref, b2_ref,
                          out_ref, acc_ref):
    """Grid = (batch, pixel_tile).

    x_ref      : (1, C, tile_hw)  f32   input pixels (lane axis = pixels)
    w_stem_ref : (F_sub, C)       bf16  stand-in backbone 1x1 conv
    b_stem_ref : (F_sub, 1)       f32
    w1_ref     : (F_sub, H_pad)   f32   fc1 with bn1, 1/HW, bn2 folded in
    b1_ref     : (1, H_pad)       f32
    w2_ref     : (H_pad, NC_pad)  f32   fc2 with bn3 folded in
    b2_ref     : (1, NC_pad)      f32
    out_ref    : (1, 1, NC_pad)   f32
    acc_ref    : (F_sub, 128)     f32   pooled-sum accumulator (scratch)
    """
    s = pl.program_id(1)
    tile_hw = x_ref.shape[2]
    chunked = (tile_hw % 128) == 0

    @pl.when(s == 0)
    def _init():
        acc_ref[...] = jnp.zeros_like(acc_ref)

    # ---- stand-in forward_features: 1x1 conv stem + ReLU -------------------
    # bf16 operands on the MXU (f32 accumulate); pixels on the lane axis keep
    # the RHS 128-lane dense, F stays on sublanes at its natural size.
    x_bf = x_ref[0].astype(jnp.bfloat16)                       # (C, tile_hw)
    feat = jnp.dot(w_stem_ref[...], x_bf,
                   preferred_element_type=jnp.float32)         # (F_sub, tile_hw) f32
    feat = jnp.maximum(feat + b_stem_ref[...], 0.0)            # f32 VPU (v5e-safe)

    # ---- partial global-average-pool sum (raw sum; 1/HW folded into fc1) ---
    if chunked:
        # VPU adds of 128-lane chunks into the (F, 128) accumulator; the
        # cross-lane reduce is deferred to the finalize branch (XLU off the
        # per-step critical path).
        acc = acc_ref[...]
        for i in range(tile_hw // 128):
            acc = acc + feat[:, i * 128:(i + 1) * 128]
        acc_ref[...] = acc
    else:
        # Fallback for feature maps whose pixel count is not a multiple of
        # 128: per-step lane reduce, every lane holds the same partial sum.
        acc_ref[...] = acc_ref[...] + jnp.sum(feat, axis=1, keepdims=True)

    @pl.when(s == pl.num_programs(1) - 1)
    def _finalize():
        if chunked:
            pooled = jnp.sum(acc_ref[...], axis=1, keepdims=True)   # (F_sub, 1)
        else:
            pooled = acc_ref[:, 0:1]                                # (F_sub, 1)
        # fc1 (bn1, 1/HW, bn2 pre-folded): VPU broadcast-mul + sublane reduce
        h = jnp.sum(w1_ref[...] * pooled, axis=0, keepdims=True) + b1_ref[...]
        h = jnp.maximum(h, 0.0)                                     # (1, H_pad)
        # fc2 (bn3 pre-folded): tiny row-vector MXU dot
        o = jnp.dot(h, w2_ref[...],
                    preferred_element_type=jnp.float32) + b2_ref[...]
        out_ref[0] = o.astype(out_ref.dtype)                        # (1, NC_pad)


# ----------------------------------------------------------------------------
# Helpers
# ----------------------------------------------------------------------------
def _round_up(n, m):
    return ((n + m - 1) // m) * m


def _pick_tile_hw(hw, cap):
    """Largest divisor of hw that is <= cap and a multiple of 128 (lane-dense
    pixel axis).  Falls back to the full axis — note that makes the f32 feat
    intermediate (hw x F x 4 B) live in one step; keep an eye on VMEM for
    very large feature maps."""
    t = (min(cap, hw) // 128) * 128
    while t >= 128:
        if hw % t == 0:
            return t
        t -= 128
    return hw


def _pad2(a, rows, cols):
    return jnp.pad(a, ((0, rows - a.shape[0]), (0, cols - a.shape[1])))


# ----------------------------------------------------------------------------
# Parameters (deterministic stand-ins for the PyTorch module's state)
# ----------------------------------------------------------------------------
def make_params(key, c_in, num_features, num_classes):
    ks = jax.random.split(key, 6)
    f, h = num_features, num_features // 2

    p = {
        # stem (stand-in backbone): 1x1 conv  c_in -> F, stored (F, C)
        "w_stem_t": jax.random.normal(ks[0], (f, c_in), jnp.float32) * 0.2,
        "b_stem": jax.random.normal(ks[1], (f,), jnp.float32) * 0.1,
        # fc1 / fc2 (x @ W convention)
        "w1": jax.random.normal(ks[2], (f, h), jnp.float32) * (f ** -0.5),
        "b1": jax.random.normal(ks[3], (h,), jnp.float32) * 0.05,
        "w2": jax.random.normal(ks[4], (h, num_classes), jnp.float32) * (h ** -0.5),
        "b2": jax.random.normal(ks[5], (num_classes,), jnp.float32) * 0.05,
    }

    # deterministic, non-trivial eval-mode BatchNorm (folded to scale/shift)
    def bn(c, phase):
        i = jnp.arange(c, dtype=jnp.float32)
        gamma = 1.0 + 0.05 * jnp.cos(i + phase)
        beta = 0.05 * jnp.sin(i + phase)
        mean = 0.02 * jnp.sin(0.5 * i + phase)
        var = 1.0 + 0.1 * jnp.abs(jnp.cos(0.3 * i + phase))
        scale = gamma / jnp.sqrt(var + 1e-5)
        shift = beta - mean * scale
        return scale, shift

    p["bn1_s"], p["bn1_b"] = bn(f, 0.0)
    p["bn2_s"], p["bn2_b"] = bn(h, 1.0)
    p["bn3_s"], p["bn3_b"] = bn(num_classes, 2.0)
    return p


# ----------------------------------------------------------------------------
# Wrapper
# ----------------------------------------------------------------------------
def custom_efficientnet_forward(x, params, num_classes, *, max_tile_hw=2048):
    B, C, H, W = x.shape
    HW = H * W
    F = params["w_stem_t"].shape[0]
    Hh = params["w1"].shape[1]

    F_sub = max(_round_up(F, 16), 16)            # sublane-rounded (bf16-friendly)
    H_pad = max(_round_up(Hh, 128), 128)         # lane-dense head dims
    NC_pad = max(_round_up(num_classes, 128), 128)

    # ---- fold eval-mode BN + 1/HW into the FC weights (exact algebra) ------
    # v = ((mean(feat)*s1 + t1) @ W1 + c1)*s2 + t2
    #   = rawsum @ [(s1/HW)[:,None] * W1 * s2] + [t1 @ (W1*s2) + c1*s2 + t2]
    inv_hw = 1.0 / HW
    w1s2 = params["w1"] * params["bn2_s"][None, :]
    w1f = (params["bn1_s"] * inv_hw)[:, None] * w1s2
    b1f = params["bn1_b"] @ w1s2 + params["b1"] * params["bn2_s"] + params["bn2_b"]
    w2f = params["w2"] * params["bn3_s"][None, :]
    b2f = params["b2"] * params["bn3_s"] + params["bn3_b"]

    # ---- zero-pad (padding MUST stay zeros: padded lanes/rows rely on
    #      ReLU(0)=0 and zero weight rows to not leak into fc1/fc2) ----------
    w_stem = _pad2(params["w_stem_t"], F_sub, C).astype(jnp.bfloat16)
    b_stem = _pad2(params["b_stem"].reshape(-1, 1), F_sub, 1)      # (F_sub, 1) f32
    w1p = _pad2(w1f, F_sub, H_pad)
    b1p = _pad2(b1f.reshape(1, -1), 1, H_pad)
    w2p = _pad2(w2f, H_pad, NC_pad)
    b2p = _pad2(b2f.reshape(1, -1), 1, NC_pad)

    # Free reshape: NCHW -> (B, C, H*W); no transpose / cast pass over HBM.
    xr = x.reshape(B, C, HW)

    tile_hw = _pick_tile_hw(HW, max_tile_hw)
    n_tiles = HW // tile_hw

    const = lambda b, s: (0, 0)   # head params: same block every grid step
    grid_spec = pltpu.PrefetchScalarGridSpec(
        num_scalar_prefetch=0,
        grid=(B, n_tiles),
        in_specs=[
            pl.BlockSpec((1, C, tile_hw), lambda b, s: (b, 0, s)),  # x (lane = pixels)
            pl.BlockSpec((F_sub, C), const),                        # w_stem_T (bf16)
            pl.BlockSpec((F_sub, 1), const),                        # b_stem column
            pl.BlockSpec((F_sub, H_pad), const),                    # fc1 (bn1,1/HW,bn2 folded)
            pl.BlockSpec((1, H_pad), const),                        # fc1 bias (folded)
            pl.BlockSpec((H_pad, NC_pad), const),                   # fc2 (bn3 folded)
            pl.BlockSpec((1, NC_pad), const),                       # fc2 bias (folded)
        ],
        out_specs=pl.BlockSpec((1, 1, NC_pad), lambda b, s: (b, 0, 0)),
        scratch_shapes=[pltpu.VMEM((F_sub, 128), jnp.float32)],
    )

    out = pl.pallas_call(
        stem_pool_head_kernel,
        out_shape=jax.ShapeDtypeStruct((B, 1, NC_pad), jnp.float32),
        grid_spec=grid_spec,
        compiler_params=pltpu.CompilerParams(
            dimension_semantics=("parallel", "arbitrary"),
            vmem_limit_bytes=32 * 1024 * 1024),
    )(xr, w_stem, b_stem, w1p, b1p, w2p, b2p)

    return out[:, 0, :num_classes]


# ----------------------------------------------------------------------------
# Pure-JAX reference (original module order: bn1 before the pool, bn2/bn3
# applied explicitly, unfolded params) — validates the kernel's algebra.
# ----------------------------------------------------------------------------
def reference_forward(x, params):
    B, C, H, W = x.shape
    xr = x.reshape(B, C, H * W)
    feat = jnp.einsum("fc,bcp->bfp",
                      params["w_stem_t"].astype(jnp.bfloat16),
                      xr.astype(jnp.bfloat16),
                      preferred_element_type=jnp.float32)            # (B,F,P)
    feat = jnp.maximum(feat + params["b_stem"][None, :, None], 0.0)
    feat = feat * params["bn1_s"][None, :, None] + params["bn1_b"][None, :, None]  # bn1
    pooled = jnp.mean(feat, axis=2)                                  # mean([2,3])
    h = pooled @ params["w1"] + params["b1"]                         # fc1
    h = jnp.maximum(h * params["bn2_s"] + params["bn2_b"], 0.0)      # bn2, relu
    o = h @ params["w2"] + params["b2"]                              # fc2
    return o * params["bn3_s"] + params["bn3_b"]                     # bn3


if __name__ == "__main__":
    B, C_IN, H, W = 2, 4, 16, 16
    NUM_FEATURES, NUM_CLASSES = 32, 8   # base_model.classifier.{in,out}_features

    key = jax.random.PRNGKey(0)
    kx, kp = jax.random.split(key)
    x = jax.random.normal(kx, (B, C_IN, H, W), jnp.float32)
    params = make_params(kp, C_IN, NUM_FEATURES, NUM_CLASSES)

    # max_tile_hw=128 -> 2 pixel-tiles at this toy size, exercising the
    # gridded accumulation path (real feature maps use the larger default).
    out = custom_efficientnet_forward(x, params, NUM_CLASSES, max_tile_hw=128)
    out = jax.block_until_ready(out)

    ref = reference_forward(x, params)
    assert out.shape == (B, NUM_CLASSES)
    assert jnp.allclose(out, ref, atol=1e-3, rtol=1e-3), \
        "Pallas kernel mismatch vs reference"

    print("KERNEL_OK")
</pallas_src>

<mosaic_0001>
module attributes {stable_mosaic.version = 11 : i64} {
  func.func @stem_pool_head_kernel(%arg0: i32, %arg1: i32, %arg2: memref<1x4x128xf32, #tpu.memory_space<vmem>>, %arg3: memref<32x4xbf16, #tpu.memory_space<vmem>>, %arg4: memref<32x1xf32, #tpu.memory_space<vmem>>, %arg5: memref<32x128xf32, #tpu.memory_space<vmem>>, %arg6: memref<1x128xf32, #tpu.memory_space<vmem>>, %arg7: memref<128x128xf32, #tpu.memory_space<vmem>>, %arg8: memref<1x128xf32, #tpu.memory_space<vmem>>, %arg9: memref<1x1x128xf32, #tpu.memory_space<vmem>>, %arg10: memref<32x128xf32, #tpu.memory_space<vmem>>) attributes {dimension_semantics = [#tpu.dimension_semantics<parallel>, #tpu.dimension_semantics<arbitrary>], iteration_bounds = array<i64: 2, 2>, scalar_prefetch = 0 : i64, scratch_operands = 1 : i64, tpu.core_type = #tpu.core_type<tc>, window_params = [{transform_indices = @transform_0, window_bounds = array<i64: 1, 4, 128>}, {pipeline_mode = #tpu.pipeline_mode<synchronous>, transform_indices = @transform_1, window_bounds = array<i64: 32, 4>}, {pipeline_mode = #tpu.pipeline_mode<synchronous>, transform_indices = @transform_2, window_bounds = array<i64: 32, 1>}, {pipeline_mode = #tpu.pipeline_mode<synchronous>, transform_indices = @transform_3, window_bounds = array<i64: 32, 128>}, {pipeline_mode = #tpu.pipeline_mode<synchronous>, transform_indices = @transform_4, window_bounds = array<i64: 1, 128>}, {pipeline_mode = #tpu.pipeline_mode<synchronous>, transform_indices = @transform_5, window_bounds = array<i64: 128, 128>}, {pipeline_mode = #tpu.pipeline_mode<synchronous>, transform_indices = @transform_6, window_bounds = array<i64: 1, 128>}, {transform_indices = @transform_7, window_bounds = array<i64: 1, 1, 128>}]} {
    %c0_i32 = arith.constant 0 : i32
    %0 = arith.cmpi eq, %arg1, %c0_i32 : i32
    %1 = arith.extui %0 : i1 to i32
    %c0_i32_0 = arith.constant 0 : i32
    %2 = arith.cmpi ne, %1, %c0_i32_0 : i32
    scf.if %2 {
      %cst_13 = arith.constant 0.000000e+00 : f32
      %19 = vector.broadcast %cst_13 : f32 to vector<32x128xf32>
      %c0_14 = arith.constant 0 : index
      %c0_15 = arith.constant 0 : index
      %20 = vector.load %arg10[%c0_14, %c0_15] : memref<32x128xf32, #tpu.memory_space<vmem>>, vector<32x128xf32>
      tpu.vector_store %arg10[%c0_14, %c0_15], %19 {strides = array<i32>} : memref<32x128xf32, #tpu.memory_space<vmem>>, vector<32x128xf32>,
    } else {
    }
    %c0 = arith.constant 0 : index
    %c0_1 = arith.constant 0 : index
    %c0_2 = arith.constant 0 : index
    %3 = vector.load %arg2[%c0, %c0_1, %c0_2] : memref<1x4x128xf32, #tpu.memory_space<vmem>>, vector<1x4x128xf32>
    %4 = vector.shape_cast %3 : vector<1x4x128xf32> to vector<4x128xf32>
    %5 = arith.truncf %4 : vector<4x128xf32> to vector<4x128xbf16>
    %c0_3 = arith.constant 0 : index
    %c0_4 = arith.constant 0 : index
    %6 = vector.load %arg3[%c0_3, %c0_4] : memref<32x4xbf16, #tpu.memory_space<vmem>>, vector<32x4xbf16>
    %cst = arith.constant dense<0.000000e+00> : vector<32x128xf32>
    %7 = tpu.matmul %6, %5, %cst {dimension_numbers = #tpu.dot_dimension_numbers<[1], [0], [0], [1], [0, 0, 1, 1], [], []>} : vector<32x4xbf16>, vector<4x128xbf16>, vector<32x128xf32> -> vector<32x128xf32>
    %c0_5 = arith.constant 0 : index
    %c0_6 = arith.constant 0 : index
    %8 = vector.load %arg4[%c0_5, %c0_6] : memref<32x1xf32, #tpu.memory_space<vmem>>, vector<32x1xf32>
    %9 = vector.broadcast %8 : vector<32x1xf32> to vector<32x128xf32>
    %10 = arith.addf %7, %9 : vector<32x128xf32>
    %cst_7 = arith.constant 0.000000e+00 : f32
    %11 = vector.broadcast %cst_7 : f32 to vector<32x128xf32>
    %12 = arith.maximumf %10, %11 : vector<32x128xf32>
    %c0_8 = arith.constant 0 : index
    %c0_9 = arith.constant 0 : index
    %13 = vector.load %arg10[%c0_8, %c0_9] : memref<32x128xf32, #tpu.memory_space<vmem>>, vector<32x128xf32>
    %14 = arith.addf %13, %12 : vector<32x128xf32>
    %c0_10 = arith.constant 0 : index
    %c0_11 = arith.constant 0 : index
    %15 = vector.load %arg10[%c0_10, %c0_11] : memref<32x128xf32, #tpu.memory_space<vmem>>, vector<32x128xf32>
    tpu.vector_store %arg10[%c0_10, %c0_11], %14 {strides = array<i32>} : memref<32x128xf32, #tpu.memory_space<vmem>>, vector<32x128xf32>,
    %c1_i32 = arith.constant 1 : i32
    %16 = arith.cmpi eq, %arg1, %c1_i32 : i32
    %17 = arith.extui %16 : i1 to i32
    %c0_i32_12 = arith.constant 0 : i32
    %18 = arith.cmpi ne, %17, %c0_i32_12 : i32
    scf.if %18 {
      %c0_13 = arith.constant 0 : index
      %c0_14 = arith.constant 0 : index
      %19 = vector.load %arg10[%c0_13, %c0_14] : memref<32x128xf32, #tpu.memory_space<vmem>>, vector<32x128xf32>
      %cst_15 = arith.constant dense<0.000000e+00> : vector<32xf32>
      %20 = vector.multi_reduction <add>, %19, %cst_15 [1] : vector<32x128xf32> to vector<32xf32>
      %21 = vector.shape_cast %20 : vector<32xf32> to vector<32x1xf32>
      %c0_16 = arith.constant 0 : index
      %c0_17 = arith.constant 0 : index
      %22 = vector.load %arg5[%c0_16, %c0_17] : memref<32x128xf32, #tpu.memory_space<vmem>>, vector<32x128xf32>
      %23 = vector.broadcast %21 : vector<32x1xf32> to vector<32x128xf32>
      %24 = arith.mulf %22, %23 : vector<32x128xf32>
      %cst_18 = arith.constant dense<0.000000e+00> : vector<128xf32>
      %25 = vector.multi_reduction <add>, %24, %cst_18 [0] : vector<32x128xf32> to vector<128xf32>
      %26 = vector.shape_cast %25 : vector<128xf32> to vector<1x128xf32>
      %c0_19 = arith.constant 0 : index
      %c0_20 = arith.constant 0 : index
      %27 = vector.load %arg6[%c0_19, %c0_20] : memref<1x128xf32, #tpu.memory_space<vmem>>, vector<1x128xf32>
      %28 = arith.addf %26, %27 : vector<1x128xf32>
      %cst_21 = arith.constant 0.000000e+00 : f32
      %29 = vector.broadcast %cst_21 : f32 to vector<1x128xf32>
      %30 = arith.maximumf %28, %29 : vector<1x128xf32>
      %c0_22 = arith.constant 0 : index
      %c0_23 = arith.constant 0 : index
      %31 = vector.load %arg7[%c0_22, %c0_23] : memref<128x128xf32, #tpu.memory_space<vmem>>, vector<128x128xf32>
      %cst_24 = arith.constant dense<0.000000e+00> : vector<1x128xf32>
      %32 = tpu.matmul %30, %31, %cst_24 {dimension_numbers = #tpu.dot_dimension_numbers<[1], [0], [0], [1], [0, 0, 1, 1], [], []>} : vector<1x128xf32>, vector<128x128xf32>, vector<1x128xf32> -> vector<1x128xf32>
      %c0_25 = arith.constant 0 : index
      %c0_26 = arith.constant 0 : index
      %33 = vector.load %arg8[%c0_25, %c0_26] : memref<1x128xf32, #tpu.memory_space<vmem>>, vector<1x128xf32>
      %34 = arith.addf %32, %33 : vector<1x128xf32>
      %c0_27 = arith.constant 0 : index
      %c0_28 = arith.constant 0 : index
      %c0_29 = arith.constant 0 : index
      %35 = vector.load %arg9[%c0_27, %c0_28, %c0_29] : memref<1x1x128xf32, #tpu.memory_space<vmem>>, vector<1x1x128xf32>
      %36 = vector.shape_cast %35 : vector<1x1x128xf32> to vector<1x128xf32>
      %37 = vector.shape_cast %34 : vector<1x128xf32> to vector<1x1x128xf32>
      tpu.vector_store %arg9[%c0_27, %c0_28, %c0_29], %37 {strides = array<i32>} : memref<1x1x128xf32, #tpu.memory_space<vmem>>, vector<1x1x128xf32>,
    } else {
    }
    return
  }
  func.func @transform_0(%arg0: i32, %arg1: i32) -> (i32, i32, i32) {
    %c0_i32 = arith.constant 0 : i32
    %c0_i32_0 = arith.constant 0 : i32
    return %arg0, %c0_i32, %arg1 : i32, i32, i32
  }
  func.func @transform_1(%arg0: i32, %arg1: i32) -> (i32, i32) {
    %c0_i32 = arith.constant 0 : i32
    %c0_i32_0 = arith.constant 0 : i32
    %c0_i32_1 = arith.constant 0 : i32
    return %c0_i32, %c0_i32_0 : i32, i32
  }
  func.func @transform_2(%arg0: i32, %arg1: i32) -> (i32, i32) {
    %c0_i32 = arith.constant 0 : i32
    %c0_i32_0 = arith.constant 0 : i32
    %c0_i32_1 = arith.constant 0 : i32
    return %c0_i32, %c0_i32_0 : i32, i32
  }
  func.func @transform_3(%arg0: i32, %arg1: i32) -> (i32, i32) {
    %c0_i32 = arith.constant 0 : i32
    %c0_i32_0 = arith.constant 0 : i32
    %c0_i32_1 = arith.constant 0 : i32
    return %c0_i32, %c0_i32_0 : i32, i32
  }
  func.func @transform_4(%arg0: i32, %arg1: i32) -> (i32, i32) {
    %c0_i32 = arith.constant 0 : i32
    %c0_i32_0 = arith.constant 0 : i32
    %c0_i32_1 = arith.constant 0 : i32
    return %c0_i32, %c0_i32_0 : i32, i32
  }
  func.func @transform_5(%arg0: i32, %arg1: i32) -> (i32, i32) {
    %c0_i32 = arith.constant 0 : i32
    %c0_i32_0 = arith.constant 0 : i32
    %c0_i32_1 = arith.constant 0 : i32
    return %c0_i32, %c0_i32_0 : i32, i32
  }
  func.func @transform_6(%arg0: i32, %arg1: i32) -> (i32, i32) {
    %c0_i32 = arith.constant 0 : i32
    %c0_i32_0 = arith.constant 0 : i32
    %c0_i32_1 = arith.constant 0 : i32
    return %c0_i32, %c0_i32_0 : i32, i32
  }
  func.func @transform_7(%arg0: i32, %arg1: i32) -> (i32, i32, i32) {
    %c0_i32 = arith.constant 0 : i32
    %c0_i32_0 = arith.constant 0 : i32
    %c0_i32_1 = arith.constant 0 : i32
    return %arg0, %c0_i32, %c0_i32_0 : i32, i32, i32
  }
}

</mosaic_0001>

<bundles_post_ra>
// kernel: tpu_custom_call.1
= control target key start
LH: loop header
LB: loop body
LE: loop exit
PB: predicated region body
PF: predicated region fallthrough
CT: control target
= control target key end

     0   :  { %12 = vsyncpa [#allocation4], 0  ;;  %s1246_s0 = inlined_call_operand.vmem [shape: f32[2,4,256], index: 0, kind: input, shape index: {}]   ;;  %s1247_s1 = inlined_call_operand.vmem [shape: bf16[32,4], index: 1, kind: input, shape index: {}]   ;;  %s1248_s2 = inlined_call_operand.vmem [shape: f32[32,1], index: 2, kind: input, shape index: {}]   ;;  %s1249_s3 = inlined_call_operand.vmem [shape: f32[32,128], index: 3, kind: input, shape index: {}]   ;;  %s1250_s4 = inlined_call_operand.vmem [shape: f32[1,128], index: 4, kind: input, shape index: {}]   ;;  %s1251_s5 = inlined_call_operand.hbm [shape: f32[128,128], index: 5, kind: input, shape index: {}]   ;;  %s1252_s6 = inlined_call_operand.vmem [shape: f32[1,128], index: 6, kind: input, shape index: {}]   ;;  %s1253_s7 = inlined_call_operand.hbm [shape: f32[2,1,128], index: 7, kind: output, shape index: {}]  }
   0x1   :  { %13 = vsyncpa [#allocation5], 0 }
   0x2   :  { %15 = vsyncpa [#allocation5 + $0x1], 0  ;;  %s1034_s24 = smov 0   ;;  %s1036_s25 = smov 0  }
   0x3   :  { %s1038_s26 = smov 0   ;;  %s1040_s27 = smov 0  }
   0x4   :  { %s1042_s28 = smov 0   ;;  %s1044_s29 = smov 0  }
   0x5   :  { %s1046_s30 = smov 0   ;;  %s1048_s8 = smov 0  }
   0x6 LB: > { %s660_s9 = sadd.s32 4294967295, %s983_s8   ;;  %s661_s10 = sadd.s32 4294967294, %s983_s8   ;;  %s983_s8 = sphi %s1048_s8, %s21_s8   ;;  %s979_s30 = sphi %s1046_s30, %s1278_s30   ;;  %s975_s29 = sphi %s1044_s29, %s1277_s29   ;;  %s971_s28 = sphi %s1042_s28, %s1276_s28   ;;  %s967_s27 = sphi %s1040_s27, %s1275_s27   ;;  %s963_s26 = sphi %s1038_s26, %s1274_s26   ;;  %s959_s25 = sphi %s1036_s25, %s1273_s25   ;;  %s955_s24 = sphi %s1034_s24, %s1272_s24  }
   0x7   : > { %s30_s11 = sadd.s32 1, %s975_s29  ;;  %s33_s12 = sadd.s32 1, %s979_s30 }
   0x8   : > { %p31_p0 = scmp.ge.s32.totalorder %s30_s11, 2  ;;  %s194_s13 = sadd.s32 1, %s963_s26 }
   0x9   : > { %p204_p1 = scmp.ne.s32.totalorder %s963_s26, %s959_s25  ;;  %p205_p2 = scmp.eq.s32.totalorder %s660_s9, 3 }
   0xa   : > { %s1280_s11 = smov (%p31_p0, %s30_s11), 0  ;;  %s1282_s12 = smov (!%p31_p0, %s33_s12), %s979_s30 }
   0xb   : > { %1259 = sst [smem:[#allocation9_spill]] %s1280_s11  ;;  %p1084_p3 = por %p205_p2, %p204_p1 }
   0xc   : > { %p210_p4 = scmp.ne.s32.totalorder %s959_s25, %s955_s24  ;;  %p35_p5 = scmp.ge.s32.totalorder %s1282_s12, 2 }
   0xd   : > { %s1260_s14 = scalar_select %p1084_p3, 1, 0 }
   0xe   : > { %p211_p6 = scmp.eq.s32.totalorder %s661_s10, 3  ;;  %p662_p7 = scmp.ge.s32.totalorder %s983_s8, 1 }
   0xf   : > { %p218_p8 = scmp.lt.s32.totalorder %s983_s8, 5  ;;  %s1284_s12 = smov (%p35_p5, %s1282_s12), 0 }
  0x10   : > { %1261 = sst [smem:[#allocation10_spill]] %s1284_s12  ;;  %p1094_p9 = por %p211_p6, %p210_p4 }
  0x11   : > { %p1098_p10 = pnand %p662_p7, %p218_p8  ;;  %s191_s17 = ssub.s32 %s979_s30, %s1284_s12 }
  0x12   : > { %s1262_s15 = scalar_select %p1094_p9, 1, 0 }
  0x13   : > { %s1263_s16 = scalar_select %p1098_p10, 1, 0 }
  0x14   : > { %p192_p11 = scmp.eq.s32.totalorder %s191_s17, 0  ;;  %p770_p12 = pneg %p1098_p10 }
  0x15   : > { %p1106_p13 = scmp.eq.s32.totalorder %s660_s9, 0  ;;  %s985_s20 = smov [#allocation3]  }
  0x16   : > { %s1111_s19 = scalar_select %p192_p11, %s963_s26, %s194_s13  }
  0x17   : > { %s1264_s18 = scalar_select %p1106_p13, 1, 0 }
  0x18   : > { %s242_s21 = sshll.u32 %s985_s20, 4  ;;  %p1115_p0 = pnand %p1106_p13, %p770_p12  ;;  %s243_s21 = int_to_ptr.vmem [resolvable:$true] %s242_s21 }
  0x19   : > { %s857_s17 = scalar_lea.hbm %s1251_s5, 2048 }
  0x1a   : > { %p858_p1 = scmp.ne.s32.totalorder %s1251_s5, %s857_s17  ;;  %p859_p2 = pneg %p1115_p0 }
  0x1b   : > { %p864_p6 = scmp.lt.u32.totalorder %s857_s17, %s1251_s5 }
  0x1c   : > { %p860_p4 = pnand %p859_p2, %p858_p1 }
  0x1e   : > { %p861_p5 = pneg %p860_p4 }
  0x20   : > { %p866_p7 = pnand %p864_p6, %p861_p5 }
  0x22   : > { %869 = shalt.err (!%p866_p7)
}
  0x23   : > { %s870_s11 = scalar_lea.vmem %s243_s21, 2048  ;;  %p878_p9 = scmp.lt.s32.totalorder %s243_s21, %s243_s21 }
  0x24   : > { %p871_p8 = scmp.ne.s32.totalorder %s243_s21, %s870_s11  ;;  %p879_p3 = scmp.lt.s32.totalorder %s870_s11, %s870_s11 }
  0x26   : > { %p873_p11 = pnand %p871_p8, %p859_p2  ;;  %p880_p13 = por %p879_p3, %p878_p9 }
  0x28   : > { %p874_p12 = pneg %p873_p11 }
  0x2a   : > { %p881_p10 = pnand %p880_p13, %p874_p12 }
  0x2c   : > { %884 = shalt.err (!%p881_p10)
}
  0x2d   : > { %s986_s12 = smov 128   ;;  %s987_s23 = smov 8  }
  0x2e   : > { %773 = dma.hbm_to_vmem [thread:$0]  (!%p1115_p0), %s1251_s5, 2048, %s243_s21, [#allocation4], %s986_s12, %s986_s12, %s987_s23  }
  0x2f   : > { %p1266_p1 = scmp.ne.s32.totalorder %s1263_s16, 0 }
  0x30   : > { %p1267_p4 = scmp.ne.s32.totalorder (!%p1266_p1), %s1264_s18, 0 }
  0x31   : > { %272 = sbr.rel (%p1266_p1) target bundleno = 714 (0x2ca), region = 48 }
  0x38   : > { %946 = dma.done.wait (%p1267_p4), [#allocation4], 2048  }
  0x39   : > { %948 = vsyncadd (%p1267_p4), [#allocation4], 4294965248  ;;  %s304_s11 = sand.u32 1, %s959_s25   ;;  %p306_p3 = scmp.lt.s32.totalorder %s971_s28, 1 }
  0x3a   : > { %p308_p9 = scmp.lt.s32.totalorder %s967_s27, 1  ;;  %s1151_s18 = scalar_lea.vmem [#allocation6], %s304_s11 }
  0x3b   : > { %s307_s22 = scalar_select %p306_p3, %s971_s28, 1 }
  0x3c   : > { %s309_s21 = scalar_select %p308_p9, %s967_s27, 1 }
  0x3d   : > { %s667_s17 = sshll.u32 %s307_s22, 1  ;;  %p669_p10 = scmp.ne.s32.totalorder %s967_s27, 0 }
  0x3e   : > { %s311_s16 = sadd.s32 %s667_s17, %s309_s21  ;;  %v988_v0 = vmov (!%p669_p10), 0.0  }
  0x3f   : > { %s668_s13 = sshll.u32 %s311_s16, 2  ;;  %318 = sbr.rel (%p669_p10) target bundleno = 70 (0x46), region = 56  ;;  %319 = vst [vmem:[#allocation2] sm:$0xff] (!%p669_p10), %v988_v0  ;;  %320 = vst [vmem:[#allocation2 + $0x8] sm:$0xff] (!%p669_p10), %v988_v0 }
  0x40   : > { %s313_s23 = scalar_lea.vmem %s1246_s0, %s668_s13  ;;  %321 = vst [vmem:[#allocation2 + $0x10] sm:$0xff] (!%p669_p10), %v988_v0  ;;  %322 = vst [vmem:[#allocation2 + $0x18] sm:$0xff] (!%p669_p10), %v988_v0 }
  0x46 PF: > { %v323_v1 = vld [vmem:[%s313_s23] sm:$0xf]  ;;  %vm370_vm0 = vcmask 1041408   ;;  %vm363_vm1 = vcmask 31744   ;;  %v331_v4 = vld [vmem:[%s1248_s2 + $0x10] sm:$0xff]  ;;  %v856_v7 = vld [vmem:[%s1247_s1 + $0x8] sm:$0xff]  }
  0x47   : > { %v855_v2 = vld [vmem:[%s1247_s1] sm:$0xff]   ;;  %v324_v3 = vpack.c.bf16 %v323_v1, %v323_v1  ;;  %v989_v8 = vmov 0   ;;  %v332_v9 = vld [vmem:[%s1248_s2 + $0x18] sm:$0xff]  ;;  %v330_v10 = vld [vmem:[%s1248_s2 + $0x8] sm:$0xff]  ;;  %p674_p13 = scmp.ne.s32.totalorder %s967_s27, 1 }
  0x48   : > { %700 = vmatprep.mubr.msk.bf16.mxu0 %vm363_vm1, %v855_v2  ;;  %v329_v5 = vld [vmem:[%s1248_s2] sm:$0xff]  ;;  %854 = vset.pattern.permute.xlu1 %v989_v8  ;;  %v429_v17 = vld [vmem:[#allocation2 + $0x10] sm:$0xff]  ;;  %v430_v26 = vld [vmem:[#allocation2 + $0x18] sm:$0xff]  ;;  %v990_v41 = vmov (!%p674_p13), 0.0|0.0   ;;  %vm991_vm2 = vmmov (!%p674_p13), 0   ;;  %v992_v63 = vmov (!%p674_p13), 0.0  }
  0x49   : > { %763 = vmatprep.subr.msk.bf16.mxu0 %vm370_vm0, %v324_v3  ;;  %v372_v6 = vsel %vm370_vm0, %v324_v3, 0  ;;  %853 = vset.pattern.permute.xlu0 %v989_v8  ;;  %v427_v22 = vld [vmem:[#allocation2] sm:$0xff]  ;;  %v428_v30 = vld [vmem:[#allocation2 + $0x8] sm:$0xff]  ;;  %v477_v43 = vld [vmem:[#allocation3 + $0x10] sm:$0xff] (!%p674_p13) }
  0x4a   : > { %699 = vmatpush3.bf16.msra.mxu0 %v372_v6  ;;  %345 = vperm.xlu1 %854, %v331_v4   ;;  %v475_v37 = vld [vmem:[#allocation3] sm:$0xff] (!%p674_p13)  ;;  %v476_v38 = vld [vmem:[#allocation3 + $0x8] sm:$0xff] (!%p674_p13)  ;;  %v478_v44 = vld [vmem:[#allocation3 + $0x18] sm:$0xff] (!%p674_p13) }
  0x4b   : > { %335 = vperm.xlu0 %853, %v329_v5   ;;  %739 = vmatprep.subr.bf16.mxu0 (!%p674_p13), %v990_v41  ;;  %v740_v42 = vpack.c.bf16 (!%p674_p13), %v476_v38, %v475_v37  ;;  %v743_v45 = vpack.c.bf16 (!%p674_p13), %v478_v44, %v477_v43  ;;  %v479_v46 = vld [vmem:[#allocation3 + $0x20] sm:$0xff] (!%p674_p13)  ;;  %v480_v47 = vld [vmem:[#allocation3 + $0x28] sm:$0xff] (!%p674_p13)  ;;  %v481_v49 = vld [vmem:[#allocation3 + $0x30] sm:$0xff] (!%p674_p13) }
  0x4c   : > { %v746_v48 = vpack.c.bf16 (!%p674_p13), %v480_v47, %v479_v46  ;;  %v482_v50 = vld [vmem:[#allocation3 + $0x38] sm:$0xff] (!%p674_p13)  ;;  %v483_v52 = vld [vmem:[#allocation3 + $0x40] sm:$0xff] (!%p674_p13)  ;;  %v484_v53 = vld [vmem:[#allocation3 + $0x48] sm:$0xff] (!%p674_p13) }
  0x4d   : > { %701 = vmatmul.mubr.msk.bf16.vlgmr.msra.gmra.mrb[0].mxu0 %vm363_vm1, %v856_v7  ;;  %v749_v51 = vpack.c.bf16 (!%p674_p13), %v482_v50, %v481_v49  ;;  %v752_v54 = vpack.c.bf16 (!%p674_p13), %v484_v53, %v483_v52  ;;  %v485_v55 = vld [vmem:[#allocation3 + $0x50] sm:$0xff] (!%p674_p13)  ;;  %v486_v56 = vld [vmem:[#allocation3 + $0x58] sm:$0xff] (!%p674_p13)  ;;  %v487_v58 = vld [vmem:[#allocation3 + $0x60] sm:$0xff] (!%p674_p13) }
  0x4e   : > { %350 = vperm.xlu1 %854, %v332_v9   ;;  %741 = vmatpush3.bf16.msra.mxu0 (!%p674_p13), %v740_v42  ;;  %v755_v57 = vpack.c.bf16 (!%p674_p13), %v486_v56, %v485_v55  ;;  %v488_v59 = vld [vmem:[#allocation3 + $0x68] sm:$0xff] (!%p674_p13)  ;;  %v489_v60 = vld [vmem:[#allocation3 + $0x70] sm:$0xff] (!%p674_p13)  ;;  %v490_v62 = vld [vmem:[#allocation3 + $0x78] sm:$0xff] (!%p674_p13) }
  0x4f   : > { %340 = vperm.xlu0 %853, %v330_v10   ;;  %742 = vmatprep.subr.bf16.mxu0 (!%p674_p13), %v990_v41  ;;  %v758_v61 = vpack.c.bf16 (!%p674_p13), %v488_v59, %v487_v58  ;;  %v761_v0 = vpack.c.bf16 (!%p674_p13), %v490_v62, %v489_v60  ;;  %v455_v3 = vld [vmem:[%s1249_s3] sm:$0xff] (!%p674_p13)  ;;  %v456_v4 = vld [vmem:[%s1249_s3 + $0x8] sm:$0xff] (!%p674_p13)  ;;  %v457_v5 = vld [vmem:[%s1249_s3 + $0x10] sm:$0xff] (!%p674_p13) }
  0x50   : > { %736 = vmatprep.mubr.msk.f32.mxu0 (!%p674_p13), %vm991_vm2, %v992_v63  ;;  %v458_v7 = vld [vmem:[%s1249_s3 + $0x18] sm:$0xff] (!%p674_p13) }
  0x52   : > { %744 = vmatpush3.bf16.msra.mxu0 (!%p674_p13), %v743_v45 }
  0x53   : > { %745 = vmatprep.subr.bf16.mxu0 (!%p674_p13), %v990_v41 }
  0x56   : > { %747 = vmatpush3.bf16.msra.mxu0 (!%p674_p13), %v746_v48 }
  0x57   : > { %748 = vmatprep.subr.bf16.mxu0 (!%p674_p13), %v990_v41 }
  0x5a   : > { %750 = vmatpush3.bf16.msra.mxu0 (!%p674_p13), %v749_v51 }
  0x5b   : > { %751 = vmatprep.subr.bf16.mxu0 (!%p674_p13), %v990_v41 }
  0x5e   : > { %753 = vmatpush3.bf16.msra.mxu0 (!%p674_p13), %v752_v54 }
  0x5f   : > { %754 = vmatprep.subr.bf16.mxu0 (!%p674_p13), %v990_v41 }
  0x62   : > { %756 = vmatpush3.bf16.msra.mxu0 (!%p674_p13), %v755_v57 }
  0x63   : > { %757 = vmatprep.subr.bf16.mxu0 (!%p674_p13), %v990_v41 }
  0x66   : > { %759 = vmatpush3.bf16.msra.mxu0 (!%p674_p13), %v758_v61 }
  0x67   : > { %760 = vmatprep.subr.bf16.mxu0 (!%p674_p13), %v990_v41 }
  0x6a   : > { %762 = vmatpush3.bf16.msra.mxu0 (!%p674_p13), %v761_v0 }
  0xc9   : > { %v346_v11 = vpop.permute.xlu1 %345 }
  0xca   : > { %v336_v12 = vpop.permute.xlu0 %335 }
  0xcd   : > { %v351_v16 = vpop.permute.xlu1 %350 }
  0xce   : > { %v341_v20 = vpop.permute.xlu0 %340 }
 0x120   : > { %v702_v13 = vpop.f32.mrb[0].mxu0 }
 0x121   : > { %v417_v14 = vadd.f32 %v702_v13, %v346_v11  ;;  %v408_v15 = vpop.f32.mrb[1].mxu0 }
 0x122   : > { %v409_v18 = vadd.f32 %v408_v15, %v336_v12  ;;  %v703_v19 = vpop.f32.mrb[2].mxu0 }
 0x123   : > { %v425_v21 = vmax.f32 %v417_v14, 0.0  ;;  %v420_v23 = vadd.f32 %v703_v19, %v351_v16  ;;  %v411_v24 = vpop.f32.mrb[3].mxu0 }
 0x124   : > { %v423_v25 = vmax.f32 %v409_v18, 0.0  ;;  %v412_v27 = vadd.f32 %v411_v24, %v341_v20  ;;  %442 = sbr.rel (%p674_p13) target bundleno = 689 (0x2b1), region = 60 }
 0x125   : > { %v433_v28 = vadd.f32 %v429_v17, %v425_v21  ;;  %v426_v29 = vmax.f32 %v420_v23, 0.0  ;;  %v472_v21 = vld [vmem:[%s1250_s4] sm:$0x1] (!%p674_p13) }
 0x126   : > { %v431_v31 = vadd.f32 %v427_v22, %v423_v25  ;;  %v424_v32 = vmax.f32 %v412_v27, 0.0  ;;  %v491_v25 = vld [vmem:[%s1252_s6] sm:$0x1] (!%p674_p13) }
 0x127   : > { %437 = vst [vmem:[#allocation2 + $0x10] sm:$0xff] %v433_v28  ;;  %v434_v33 = vadd.f32 %v430_v26, %v426_v29 }
 0x128   : > { %435 = vst [vmem:[#allocation2] sm:$0xff] %v431_v31  ;;  %v432_v34 = vadd.f32 %v428_v30, %v424_v32 }
 0x129   : > { %438 = vst [vmem:[#allocation2 + $0x18] sm:$0xff] %v434_v33 }
 0x12a   : > { %436 = vst [vmem:[#allocation2 + $0x8] sm:$0xff] %v432_v34 }
 0x12e   : > { %v445_v36 = vld [vmem:[#allocation2 + $0x10] sm:$0xff] }
 0x12f   : > { %v443_v35 = vld [vmem:[#allocation2] sm:$0xff]  ;;  %451 = vadd.xlane.f32.xlu1 %v445_v36 }
 0x130   : > { %447 = vadd.xlane.f32.xlu0 %v443_v35  ;;  %v446_v40 = vld [vmem:[#allocation2 + $0x18] sm:$0xff] }
 0x131   : > { %v444_v39 = vld [vmem:[#allocation2 + $0x8] sm:$0xff] }
 0x133   : > { %453 = vadd.xlane.f32.xlu1 %v446_v40 }
 0x134   : > { %449 = vadd.xlane.f32.xlu0 %v444_v39 }
 0x1bc   : > { %v452_v2 = vpop.xlane.xlu1 %451 }
 0x1bd   : > { %v448_v1 = vpop.xlane.xlu0 %447  ;;  %v461_v11 = vmul.f32 %v457_v5, %v452_v2 }
 0x1be   : > { %v459_v9 = vmul.f32 %v455_v3, %v448_v1 }
 0x1c0   : > { %v454_v8 = vpop.xlane.xlu1 %453 }
 0x1c1   : > { %v450_v6 = vpop.xlane.xlu0 %449  ;;  %v462_v13 = vmul.f32 %v458_v7, %v454_v8 }
 0x1c2   : > { %v460_v10 = vmul.f32 %v456_v4, %v450_v6 }
 0x1c4   : > { %v463_v12 = vadd.f32 %v460_v10, %v459_v9 }
 0x1c6   : > { %v464_v14 = vadd.f32 %v463_v12, %v461_v11 }
 0x1c8   : > { %v465_v15 = vadd.f32 %v464_v14, %v462_v13 }
 0x1ca   : > { %v466_v16 = vrot.slane %v465_v15, 4 }
 0x1cc   : > { %v467_v17 = vadd.f32 %v466_v16, %v465_v15 }
 0x1ce   : > { %v468_v18 = vrot.slane %v467_v17, 2 }
 0x1d0   : > { %v469_v19 = vadd.f32 %v468_v18, %v467_v17 }
 0x1d2   : > { %v470_v20 = vrot.slane %v469_v19, 1 }
 0x1d4   : > { %v471_v22 = vadd.f32 %v470_v20, %v469_v19 }
 0x1d6   : > { %v473_v23 = vadd.f32 %v472_v21, %v471_v22 }
 0x1d8   : > { %v474_v24 = vmax.f32 %v473_v23, 0.0 }
 0x1da   : > { %737 = vmatmul.mubr.f32.vlgmr.msra.gmra.mrb[0].mxu0 %v474_v24 }
 0x2ad   : > { %v558_v26 = vpop.f32.mrb[0].mxu0 }
 0x2ae   : > { %v559_v27 = vadd.f32 %v558_v26, %v491_v25  ;;  %v738_v28 = vpop.f32.mrb[1].mxu0 }
 0x2b0   : > { %562 = vst [vmem:[%s1151_s18] sm:$0x1] %v559_v27 }
 0x2b1 PF: > { %s675_s22 = sshll.u32 %s971_s28, 4  ;;  %s576_s13 = sshll.u32 %s1151_s18, 4  ;;  %s577_s13 = int_to_ptr.vmem [resolvable:$true] %s576_s13 }
 0x2b2   : > { %s1196_s16 = scalar_lea.hbm %s1253_s7, %s675_s22  ;;  %s564_s20 = scalar_lea.sflag [#allocation5], %s304_s11 }
 0x2b3   : > { %s885_s12 = scalar_lea.vmem %s577_s13, 16  ;;  %p1268_p2 = scmp.ne.s32.totalorder %s1260_s14, 0 }
 0x2b4   : > { %p886_p0 = scmp.ne.s32.totalorder %s577_s13, %s885_s12  ;;  %s993_s23 = smov [#allocation6]  }
 0x2b5   : > { %s889_s10 = sshll.u32 %s993_s23, 4  ;;  %s890_s10 = int_to_ptr.vmem [resolvable:$false] %s889_s10 }
 0x2b6   : > { %p887_p5 = pnand %p886_p0, %p1268_p2  ;;  %s891_s9 = scalar_lea.vmem %s890_s10, 32 }
 0x2b7   : > { %p892_p7 = scmp.lt.s32.totalorder %s577_s13, %s890_s10  ;;  %p893_p8 = scmp.lt.s32.totalorder %s891_s9, %s885_s12 }
 0x2b8   : > { %p888_p6 = pneg %p887_p5 }
 0x2b9   : > { %p894_p11 = por %p893_p8, %p892_p7 }
 0x2bb   : > { %p895_p12 = pnand %p894_p11, %p888_p6 }
 0x2bd   : > { %898 = shalt.err (!%p895_p12)
}
 0x2be   : > { %s899_s28 = scalar_lea.hbm %s1196_s16, 16  ;;  %s903_s27 = scalar_lea.hbm %s1253_s7, 32 }
 0x2bf   : > { %p900_p1 = scmp.ne.s32.totalorder %s1196_s16, %s899_s28  ;;  %p904_p9 = scmp.lt.u32.totalorder %s1196_s16, %s1253_s7 }
 0x2c0   : > { %p905_p10 = scmp.lt.u32.totalorder %s903_s27, %s899_s28  ;;  %p907_p0 = scmp.lt.u32.totalorder %s899_s28, %s1196_s16 }
 0x2c1   : > { %p901_p4 = pnand %p900_p1, %p1268_p2 }
 0x2c2   : > { %p906_p13 = por %p905_p10, %p904_p9 }
 0x2c3   : > { %p902_p3 = pneg %p901_p4 }
 0x2c4   : > { %p908_p5 = por %p907_p0, %p906_p13 }
 0x2c6   : > { %p909_p6 = pnand %p908_p5, %p902_p3 }
 0x2c8   : > { %912 = shalt.err (!%p909_p6)
}
 0x2c9   : > { %768 = dma.vmem_to_hbm [thread:$0]  (%p1268_p2), %s577_s13, 16, %s1196_s16, %s564_s20  }
 0x2ca PF: > { %p780_p7 = scmp.ge.s32.totalorder %s983_s8, 2  ;;  %s588_s17 = sand.u32 1, %s955_s24  }
 0x2cb   : > { %p1269_p8 = scmp.ne.s32.totalorder %s1262_s15, 0  ;;  %s589_s12 = scalar_lea.sflag [#allocation5], %s588_s17 }
 0x2cd   : > { %p775_p11 = pnand %p780_p7, %p1269_p8 }
 0x2cf   : > { %950 = dma.done.wait (!%p775_p11), %s589_s12, 16  }
 0x2d0   : > { %952 = vsyncadd (!%p775_p11), %s589_s12, 4294967280  ;;  %s21_s8 = sadd.s32 1, %s983_s8   ;;  %s1270_s14 = sld [smem:[#allocation9_spill]] }
 0x2d1   : > { %p18_p12 = scmp.ge.s32.totalorder %s21_s8, 6   ;;  %s1271_s16 = sld [smem:[#allocation10_spill]] }
 0x2d2   : > { %s1272_s24 = smov %s959_s25  ;;  %s1273_s25 = smov %s963_s26 }
 0x2d3   : > { %s1274_s26 = smov %s1111_s19  ;;  %s1275_s27 = smov %s975_s29 }
 0x2d4   : > { %s1276_s28 = smov %s979_s30  ;;  %20 = sbr.rel (!%p18_p12) target bundleno = 6 (0x6), region = 96 }
 0x2d6   : > { %s1277_s29 = smov %s1270_s14 }
 0x2d7   : > { %s1278_s30 = smov %s1271_s16 }
 0x2db   :  { %593 = vsyncpa [#allocation4], 1 }
 0x2dc   :  { %595 = vsyncpa [#allocation4 + $0x1], 1 }
 0x2dd   :  { %596 = vsyncpa [#allocation5], 1 }
 0x2de   :  { %598 = vsyncpa [#allocation5 + $0x1], 1 }

</bundles_post_ra>
